<compile_context>
chip_gen: v6e
topology: v6e:2x2x1
jax: 0.10.0
libtpu: 0.0.40
codegen_flags: <defaults>
</compile_context>

<pallas_src>
import math
import numpy as np
import jax
import jax.numpy as jnp
from jax import lax
from jax.experimental import pallas as pl
from jax.experimental.pallas import tpu as pltpu


# 48 MiB: leaves headroom on v7x (64 MiB physical per TC); fine on v5e/v6e.
_VMEM_LIMIT = 48 << 20


# ------------------------------ tile helper -----------------------------------
def _pick_tile(dim, cap):
    """Largest tile <= cap that evenly divides dim, preferring MXU-friendly
    multiples of 256 (v6e/v7x), then 128 (v5e), then 8.  Whole dim if it fits.
    TODO(synk): fallback returns the full dim when no aligned divisor exists;
    awkward sizes should be padded by the caller instead."""
    if dim <= cap:
        return dim
    for align in (256, 128, 8):
        t = (cap // align) * align
        while t >= align:
            if dim % t == 0:
                return t
            t -= align
    return dim


# ----------------------------- QKV linear kernel ------------------------------
def _qkv_linear_kernel(x_ref, w_ref, b_ref, o_ref, acc_ref):
    k = pl.program_id(2)

    @pl.when(k == 0)
    def _init():
        acc_ref[...] = jnp.zeros_like(acc_ref)

    acc_ref[...] += jnp.dot(x_ref[...], w_ref[...],
                            preferred_element_type=jnp.float32)

    @pl.when(k == pl.num_programs(2) - 1)
    def _finalize():
        o_ref[...] = (acc_ref[...] + b_ref[...]).astype(o_ref.dtype)


def qkv_linear(x2d, w_bf16, b, out_dtype, *, tm_cap=512, tn_cap=512, tk_cap=1024):
    """x2d: [M, H]; w_bf16: [H, O] bf16; b: [O] f32.  Returns [M, O] in out_dtype."""
    M, H = x2d.shape
    O = w_bf16.shape[1]
    tm = _pick_tile(M, tm_cap)
    tn = _pick_tile(O, tn_cap)
    tk = _pick_tile(H, tk_cap)
    xb = x2d.astype(jnp.bfloat16)
    b2 = b.astype(jnp.float32).reshape(1, O)
    return pl.pallas_call(
        _qkv_linear_kernel,
        out_shape=jax.ShapeDtypeStruct((M, O), out_dtype),
        grid=(M // tm, O // tn, H // tk),
        in_specs=[
            pl.BlockSpec((tm, tk), lambda i, j, k: (i, k)),
            pl.BlockSpec((tk, tn), lambda i, j, k: (k, j)),
            pl.BlockSpec((1, tn), lambda i, j, k: (0, j)),
        ],
        out_specs=pl.BlockSpec((tm, tn), lambda i, j, k: (i, j)),
        scratch_shapes=[pltpu.VMEM((tm, tn), jnp.float32)],
        compiler_params=pltpu.CompilerParams(
            dimension_semantics=("parallel", "parallel", "arbitrary"),
            vmem_limit_bytes=_VMEM_LIMIT,
        ),
    )(xb, w_bf16.astype(jnp.bfloat16), b2)


# ----------------------------- Attention kernel -------------------------------
def _make_attn_kernel(n_rep):
    def attn_kernel(q_ref, k_ref, v_ref, m_ref, o_ref, m_sc, l_sc, acc_sc):
        t = pl.program_id(2)

        @pl.when(t == 0)
        def _init():
            m_sc[...] = jnp.full_like(m_sc, -jnp.inf)
            l_sc[...] = jnp.zeros_like(l_sc)
            acc_sc[...] = jnp.zeros_like(acc_sc)

        _, nr, tq, d = q_ref.shape
        G = nr * tq
        q = q_ref[0].reshape(G, d)              # [G,  d] bf16, 1/sqrt(d) folded in
        k = k_ref[0]                            # [Tk, d] bf16
        v = v_ref[0]                            # [Tk, d] bf16
        mask = m_ref[0].astype(jnp.float32)     # [tq, Tk] additive mask

        # q @ k^T without materializing a transpose: contract the lane axis.
        s = lax.dot_general(q, k, (((1,), (1,)), ((), ())),
                            preferred_element_type=jnp.float32)      # [G, Tk]
        tk = s.shape[-1]
        if n_rep > 1:
            # Broadcast-add the mask across the n_rep query heads of the group
            # (no sublane copies / concatenation).
            s = (s.reshape(nr, tq, tk) + mask[None]).reshape(G, tk)
        else:
            s = s + mask

        # Online softmax (flash) accumulation over the KV tiles.
        m_new = jnp.maximum(m_sc[...], jnp.max(s, axis=-1, keepdims=True))
        alpha = jnp.exp(m_sc[...] - m_new)
        p = jnp.exp(s - m_new)
        l_sc[...] = alpha * l_sc[...] + jnp.sum(p, axis=-1, keepdims=True)
        acc_sc[...] = alpha * acc_sc[...] + lax.dot_general(
            p.astype(v.dtype), v, (((1,), (0,)), ((), ())),
            preferred_element_type=jnp.float32)
        m_sc[...] = m_new

        @pl.when(t == pl.num_programs(2) - 1)
        def _finalize():
            inv_l = pl.reciprocal(l_sc[...], approx=True)
            o_ref[0] = (acc_sc[...] * inv_l).reshape(nr, tq, d).astype(o_ref.dtype)

    return attn_kernel


def gqa_attention(q_g, k_h, v_h, mask, n_kv, *, out_dtype=jnp.float32, tk_cap=None):
    """q_g:  [B*n_kv, n_rep, Sq, d] bf16 (1/sqrt(d) folded into q)
       k_h/v_h: [B*n_kv, St, d] bf16
       mask: [B_m, Sq, St] bf16 additive mask, B_m in {1, B}."""
    BH, n_rep, Sq, d = q_g.shape
    St = k_h.shape[1]
    B_m = mask.shape[0]

    # Query tiling: keep n_rep*tq <= ~256 rows so the [G, Tk] f32 score tile
    # stays vreg/VMEM friendly on prefill.  Decode (Sq small) is a single tile.
    tq = _pick_tile(Sq, max(8, 256 // max(n_rep, 1)))

    # KV tiling: big tiles for decode (per-step compute is tiny, fewer grid
    # steps + bigger DMAs), moderate for prefill.
    if tk_cap is None:
        tk_cap = 2048 if Sq <= 16 else 512
    if St <= tk_cap:
        tk = St
    else:
        tk = tk_cap
        pad = (-St) % tk
        if pad:
            k_h = jnp.pad(k_h, ((0, 0), (0, pad), (0, 0)))
            v_h = jnp.pad(v_h, ((0, 0), (0, pad), (0, 0)))
            mask = jnp.pad(mask, ((0, 0), (0, 0), (0, pad)), constant_values=-1e9)
            St += pad
    n_t = St // tk
    n_q = Sq // tq

    if B_m > 1:
        mask_idx = lambda bh, qi, t: (bh // n_kv, qi, t)
    else:
        mask_idx = lambda bh, qi, t: (0, qi, t)

    return pl.pallas_call(
        _make_attn_kernel(n_rep),
        out_shape=jax.ShapeDtypeStruct((BH, n_rep, Sq, d), out_dtype),
        grid=(BH, n_q, n_t),
        in_specs=[
            pl.BlockSpec((1, n_rep, tq, d), lambda bh, qi, t: (bh, 0, qi, 0)),
            pl.BlockSpec((1, tk, d), lambda bh, qi, t: (bh, t, 0)),
            pl.BlockSpec((1, tk, d), lambda bh, qi, t: (bh, t, 0)),
            pl.BlockSpec((1, tq, tk), mask_idx),
        ],
        out_specs=pl.BlockSpec((1, n_rep, tq, d), lambda bh, qi, t: (bh, 0, qi, 0)),
        scratch_shapes=[
            pltpu.VMEM((n_rep * tq, 1), jnp.float32),   # running max
            pltpu.VMEM((n_rep * tq, 1), jnp.float32),   # running denom
            pltpu.VMEM((n_rep * tq, d), jnp.float32),   # output accumulator
        ],
        compiler_params=pltpu.CompilerParams(
            dimension_semantics=("parallel", "parallel", "arbitrary"),
            vmem_limit_bytes=_VMEM_LIMIT,
        ),
    )(q_g, k_h, v_h, mask)


# ------------------------------- Module wrapper --------------------------------
class MaskedMHAPallas:
    def __init__(self, hidden_size, n_head, n_head_kv, head_dim, key):
        self.hidden_size = hidden_size
        self.num_heads = n_head
        self.num_kv = n_head_kv
        self.head_dim = head_dim
        out_dim = (n_head_kv * 2 + n_head) * head_dim
        kw, kb = jax.random.split(key)
        # deterministic synthetic init (nn.Linear weight/bias shapes)
        self.W = jax.random.normal(kw, (hidden_size, out_dim), jnp.float32) * 0.02
        self.b = jax.random.normal(kb, (out_dim,), jnp.float32) * 0.02
        # bf16 copy streamed by the matmul kernel (halves HBM weight traffic,
        # MXU-native); f32 master kept for the reference check.
        self.W_bf16 = self.W.astype(jnp.bfloat16)

    def __call__(self, input_t, key_cache, value_cache, max_position,
                 attention_mask, beam_idx, indirect_access_kv_cache=False,
                 offset=0, enable_linear=True):
        # TODO(synk): indirect_access_kv_cache=True path relies on
        # torch.ops.torch_ipex.masked_multihead_self_attention; not implemented.
        assert not indirect_access_kv_cache
        B, S, H = input_t.shape
        nh, nkv, d = self.num_heads, self.num_kv, self.head_dim
        n_rep = nh // nkv

        if enable_linear:
            # bf16 fused output halves the store + re-read feeding the layout pass.
            fused = qkv_linear(input_t.reshape(B * S, H), self.W_bf16, self.b,
                               out_dtype=jnp.bfloat16).reshape(B, S, -1)
        else:
            fused = input_t

        qd, kd = nh * d, nkv * d
        query = fused[:, :, :qd].reshape(B, S, nh, d)
        key = fused[:, :, qd:qd + kd].reshape(B, S, nkv, d)
        value = fused[:, :, qd + kd:].reshape(B, S, nkv, d)

        # TODO(synk): for decode, replace concat with a preallocated cache updated
        # in place (input_output_aliases / dynamic_update_slice) to avoid the O(St)
        # copy per step; kept as concat to preserve the module's return semantics.
        if key_cache is not None:
            key = jnp.concatenate([key_cache, key], axis=1)
            value = jnp.concatenate([value_cache, value], axis=1)
            key_cache_out = key
            value_cache_out = value
        else:
            key_cache_out = key.astype(input_t.dtype)
            value_cache_out = value.astype(input_t.dtype)

        St = key.shape[1]
        scale_inv = 1.0 / math.sqrt(d)

        # TODO(synk): fusing the head split + transpose + scale + bf16 cast into
        # the QKV kernel's finalize (three outputs with per-head out_specs) would
        # remove the remaining extra HBM pass; kept in the wrapper for simplicity.
        q_g = (query.transpose(0, 2, 1, 3) * scale_inv).astype(jnp.bfloat16)
        q_g = q_g.reshape(B, nkv, n_rep, S, d).reshape(B * nkv, n_rep, S, d)
        k_h = key.transpose(0, 2, 1, 3).astype(jnp.bfloat16).reshape(B * nkv, St, d)
        v_h = value.transpose(0, 2, 1, 3).astype(jnp.bfloat16).reshape(B * nkv, St, d)

        # Mask: keep un-broadcast over batch, drop the (size-1) head dim, clamp so
        # -inf / finfo.min stay finite in bf16, and stream it in bf16.
        if attention_mask is None:
            am = jnp.zeros((1, S, St), jnp.float32)
        else:
            am = jnp.asarray(attention_mask, jnp.float32)
            if am.ndim == 4:
                am = am[:, 0]   # TODO(synk): per-head additive masks not supported
            elif am.ndim == 2:
                am = am[None]
            am = jnp.broadcast_to(am, (am.shape[0], S, St))
        am_bf = jnp.maximum(am, -1e38).astype(jnp.bfloat16)

        out_g = gqa_attention(q_g, k_h, v_h, am_bf, nkv, out_dtype=jnp.float32)
        out = out_g.reshape(B, nkv, n_rep, S, d).reshape(B, nh, S, d)
        return (out, None, key_cache_out, value_cache_out, None)


# ------------------------------- References ------------------------------------
def reference_f32(x, W, b, key_cache, value_cache, mask, nh, nkv, d):
    """Exact module semantics, all-f32 (matches the PyTorch reference path)."""
    B, S, H = x.shape
    fused = (x.reshape(B * S, H) @ W + b).reshape(B, S, -1)
    qd, kd = nh * d, nkv * d
    query = fused[:, :, :qd].reshape(B, S, nh, d)
    key = fused[:, :, qd:qd + kd].reshape(B, S, nkv, d)
    value = fused[:, :, qd + kd:].reshape(B, S, nkv, d)
    key = jnp.concatenate([key_cache, key], axis=1)
    value = jnp.concatenate([value_cache, value], axis=1)
    n_rep = nh // nkv
    key_r = jnp.repeat(key, n_rep, axis=2)
    value_r = jnp.repeat(value, n_rep, axis=2)
    q = query.transpose(0, 2, 1, 3)
    k = key_r.transpose(0, 2, 1, 3)
    v = value_r.transpose(0, 2, 1, 3)
    scores = jnp.einsum("bhqd,bhkd->bhqk", q, k) / (d ** 0.5) + mask
    probs = jax.nn.softmax(scores, axis=-1)
    return jnp.einsum("bhqk,bhkd->bhqd", probs, v)


def reference_kernel_math(x, W, b, key_cache, value_cache, mask, nh, nkv, d):
    """Same math/dtypes as the Pallas pipeline (bf16 operands, f32 accumulation,
    bf16 fused-QKV output, scale folded into q, unnormalized-p second matmul,
    clamped bf16 mask)."""
    B, S, H = x.shape
    fused = (jnp.dot(x.reshape(B * S, H).astype(jnp.bfloat16),
                     W.astype(jnp.bfloat16),
                     preferred_element_type=jnp.float32)
             + b.astype(jnp.float32)).astype(jnp.bfloat16)
    fused = fused.reshape(B, S, -1)
    qd, kd = nh * d, nkv * d
    query = fused[:, :, :qd].reshape(B, S, nh, d)
    key = fused[:, :, qd:qd + kd].reshape(B, S, nkv, d)
    value = fused[:, :, qd + kd:].reshape(B, S, nkv, d)
    key = jnp.concatenate([key_cache, key], axis=1)
    value = jnp.concatenate([value_cache, value], axis=1)
    n_rep = nh // nkv
    scale = 1.0 / math.sqrt(d)
    q = (query.transpose(0, 2, 1, 3) * scale).astype(jnp.bfloat16)
    k = jnp.repeat(key.transpose(0, 2, 1, 3).astype(jnp.bfloat16), n_rep, axis=1)
    v = jnp.repeat(value.transpose(0, 2, 1, 3).astype(jnp.bfloat16), n_rep, axis=1)
    mask_b = jnp.maximum(mask.astype(jnp.float32), -1e38).astype(jnp.bfloat16)
    mask_b = mask_b.astype(jnp.float32)
    s = jnp.einsum("bhqd,bhkd->bhqk", q, k,
                   preferred_element_type=jnp.float32) + mask_b
    m = jnp.max(s, axis=-1, keepdims=True)
    p = jnp.exp(s - m)
    l = jnp.sum(p, axis=-1, keepdims=True)
    out = jnp.einsum("bhqk,bhkd->bhqd", p.astype(jnp.bfloat16), v,
                     preferred_element_type=jnp.float32)
    return out / l


# ------------------------------------ main -------------------------------------
if __name__ == "__main__":
    # Small shapes consistent with the module's forward semantics.
    B, S_q, hidden = 2, 8, 32
    n_head, n_kv, head_dim = 4, 2, 8
    cache_len = 8
    S_t = cache_len + S_q

    root = jax.random.PRNGKey(0)
    k_mod, k_x, k_kc, k_vc = jax.random.split(root, 4)

    mha = MaskedMHAPallas(hidden, n_head, n_kv, head_dim, k_mod)

    x = jax.random.normal(k_x, (B, S_q, hidden), jnp.float32)
    key_cache = jax.random.normal(k_kc, (B, cache_len, n_kv, head_dim), jnp.float32)
    value_cache = jax.random.normal(k_vc, (B, cache_len, n_kv, head_dim), jnp.float32)

    # additive mask: full visibility over the cache, causal over the new tokens
    causal = jnp.tril(jnp.ones((S_q, S_q), jnp.float32))
    allow = jnp.concatenate([jnp.ones((S_q, cache_len), jnp.float32), causal], axis=-1)
    attention_mask = jnp.where(allow > 0, 0.0, -1e9).astype(jnp.float32)
    attention_mask = jnp.broadcast_to(attention_mask, (B, 1, S_q, S_t))

    out, _, kc_out, vc_out, _ = mha(
        x, key_cache, value_cache, max_position=S_t,
        attention_mask=attention_mask, beam_idx=None,
        indirect_access_kv_cache=False, offset=0, enable_linear=True,
    )
    out = jax.block_until_ready(out)

    ref_bf16 = reference_kernel_math(
        x, mha.W, mha.b, key_cache, value_cache, attention_mask,
        n_head, n_kv, head_dim)
    ref_f32 = reference_f32(
        x, mha.W, mha.b, key_cache, value_cache, attention_mask,
        n_head, n_kv, head_dim)

    # Tight check against a reference using identical bf16/f32 math.
    np.testing.assert_allclose(np.asarray(out), np.asarray(ref_bf16),
                               rtol=5e-3, atol=5e-3)
    # Semantic check against full-f32 module math (bf16 precision budget).
    np.testing.assert_allclose(np.asarray(out), np.asarray(ref_f32),
                               rtol=2e-2, atol=2e-2)
    assert kc_out.shape == (B, S_t, n_kv, head_dim)
    assert vc_out.shape == (B, S_t, n_kv, head_dim)

    print("KERNEL_OK")
</pallas_src>

<mosaic_0001>
module attributes {stable_mosaic.version = 11 : i64} {
  func.func @_qkv_linear_kernel(%arg0: i32, %arg1: i32, %arg2: i32, %arg3: memref<16x32xbf16, #tpu.memory_space<vmem>>, %arg4: memref<32x64xbf16, #tpu.memory_space<vmem>>, %arg5: memref<1x64xf32, #tpu.memory_space<vmem>>, %arg6: memref<16x64xbf16, #tpu.memory_space<vmem>>, %arg7: memref<16x64xf32, #tpu.memory_space<vmem>>) attributes {dimension_semantics = [#tpu.dimension_semantics<parallel>, #tpu.dimension_semantics<parallel>, #tpu.dimension_semantics<arbitrary>], iteration_bounds = array<i64: 1, 1, 1>, scalar_prefetch = 0 : i64, scratch_operands = 1 : i64, tpu.core_type = #tpu.core_type<tc>, window_params = [{transform_indices = @transform_0, window_bounds = array<i64: 16, 32>}, {transform_indices = @transform_1, window_bounds = array<i64: 32, 64>}, {transform_indices = @transform_2, window_bounds = array<i64: 1, 64>}, {transform_indices = @transform_3, window_bounds = array<i64: 16, 64>}]} {
    %c0_i32 = arith.constant 0 : i32
    %0 = arith.cmpi eq, %arg2, %c0_i32 : i32
    %1 = arith.extui %0 : i1 to i32
    %c0_i32_0 = arith.constant 0 : i32
    %2 = arith.cmpi ne, %1, %c0_i32_0 : i32
    scf.if %2 {
      %cst_10 = arith.constant 0.000000e+00 : f32
      %12 = vector.broadcast %cst_10 : f32 to vector<16x64xf32>
      %c0_11 = arith.constant 0 : index
      %c0_12 = arith.constant 0 : index
      %13 = vector.load %arg7[%c0_11, %c0_12] : memref<16x64xf32, #tpu.memory_space<vmem>>, vector<16x64xf32>
      tpu.vector_store %arg7[%c0_11, %c0_12], %12 {strides = array<i32>} : memref<16x64xf32, #tpu.memory_space<vmem>>, vector<16x64xf32>,
    } else {
    }
    %c0 = arith.constant 0 : index
    %c0_1 = arith.constant 0 : index
    %3 = vector.load %arg7[%c0, %c0_1] : memref<16x64xf32, #tpu.memory_space<vmem>>, vector<16x64xf32>
    %c0_2 = arith.constant 0 : index
    %c0_3 = arith.constant 0 : index
    %4 = vector.load %arg3[%c0_2, %c0_3] : memref<16x32xbf16, #tpu.memory_space<vmem>>, vector<16x32xbf16>
    %c0_4 = arith.constant 0 : index
    %c0_5 = arith.constant 0 : index
    %5 = vector.load %arg4[%c0_4, %c0_5] : memref<32x64xbf16, #tpu.memory_space<vmem>>, vector<32x64xbf16>
    %cst = arith.constant dense<0.000000e+00> : vector<16x64xf32>
    %6 = tpu.matmul %4, %5, %cst {dimension_numbers = #tpu.dot_dimension_numbers<[1], [0], [0], [1], [0, 0, 1, 1], [], []>} : vector<16x32xbf16>, vector<32x64xbf16>, vector<16x64xf32> -> vector<16x64xf32>
    %7 = arith.addf %3, %6 : vector<16x64xf32>
    %c0_6 = arith.constant 0 : index
    %c0_7 = arith.constant 0 : index
    %8 = vector.load %arg7[%c0_6, %c0_7] : memref<16x64xf32, #tpu.memory_space<vmem>>, vector<16x64xf32>
    tpu.vector_store %arg7[%c0_6, %c0_7], %7 {strides = array<i32>} : memref<16x64xf32, #tpu.memory_space<vmem>>, vector<16x64xf32>,
    %c0_i32_8 = arith.constant 0 : i32
    %9 = arith.cmpi eq, %arg2, %c0_i32_8 : i32
    %10 = arith.extui %9 : i1 to i32
    %c0_i32_9 = arith.constant 0 : i32
    %11 = arith.cmpi ne, %10, %c0_i32_9 : i32
    scf.if %11 {
      %c0_10 = arith.constant 0 : index
      %c0_11 = arith.constant 0 : index
      %12 = vector.load %arg7[%c0_10, %c0_11] : memref<16x64xf32, #tpu.memory_space<vmem>>, vector<16x64xf32>
      %c0_12 = arith.constant 0 : index
      %c0_13 = arith.constant 0 : index
      %13 = vector.load %arg5[%c0_12, %c0_13] : memref<1x64xf32, #tpu.memory_space<vmem>>, vector<1x64xf32>
      %14 = vector.broadcast %13 : vector<1x64xf32> to vector<16x64xf32>
      %15 = arith.addf %12, %14 : vector<16x64xf32>
      %16 = arith.truncf %15 : vector<16x64xf32> to vector<16x64xbf16>
      %c0_14 = arith.constant 0 : index
      %c0_15 = arith.constant 0 : index
      %17 = vector.load %arg6[%c0_14, %c0_15] : memref<16x64xbf16, #tpu.memory_space<vmem>>, vector<16x64xbf16>
      tpu.vector_store %arg6[%c0_14, %c0_15], %16 {strides = array<i32>} : memref<16x64xbf16, #tpu.memory_space<vmem>>, vector<16x64xbf16>,
    } else {
    }
    return
  }
  func.func @transform_0(%arg0: i32, %arg1: i32, %arg2: i32) -> (i32, i32) {
    %c0_i32 = arith.constant 0 : i32
    return %arg0, %arg2 : i32, i32
  }
  func.func @transform_1(%arg0: i32, %arg1: i32, %arg2: i32) -> (i32, i32) {
    %c0_i32 = arith.constant 0 : i32
    return %arg2, %arg1 : i32, i32
  }
  func.func @transform_2(%arg0: i32, %arg1: i32, %arg2: i32) -> (i32, i32) {
    %c0_i32 = arith.constant 0 : i32
    %c0_i32_0 = arith.constant 0 : i32
    return %c0_i32, %arg1 : i32, i32
  }
  func.func @transform_3(%arg0: i32, %arg1: i32, %arg2: i32) -> (i32, i32) {
    %c0_i32 = arith.constant 0 : i32
    return %arg0, %arg1 : i32, i32
  }
}

</mosaic_0001>

<bundles_post_ra>
// kernel: tpu_custom_call.1
= control target key start
LH: loop header
LB: loop body
LE: loop exit
PB: predicated region body
PF: predicated region fallthrough
CT: control target
= control target key end

     0   :  { %8 = vsyncpa [#allocation4], 0  ;;  %s317_s0 = inlined_call_operand.hbm [shape: bf16[16,32], index: 0, kind: input, shape index: {}]   ;;  %s318_s1 = inlined_call_operand.hbm [shape: bf16[32,64], index: 1, kind: input, shape index: {}]   ;;  %s319_s2 = inlined_call_operand.vmem [shape: f32[1,64], index: 2, kind: input, shape index: {}]   ;;  %s320_s3 = inlined_call_operand.hbm [shape: bf16[16,64], index: 3, kind: output, shape index: {}]  }
   0x1   :  { %9 = vsyncpa [#allocation7], 0 }
   0x2   :  { %10 = vsyncpa [#allocation5], 0  ;;  %s265_s12 = smov [#allocation3]  }
   0x3   :  { %s16_s13 = sshll.u32 %s265_s12, 4  ;;  %s17_s13 = int_to_ptr.vmem [resolvable:$true] %s16_s13 }
   0x4   :  { %s207_s14 = scalar_lea.vmem %s17_s13, 128  ;;  %p212_p1 = scmp.lt.s32.totalorder %s17_s13, %s17_s13 }
   0x5   :  { %p208_p0 = scmp.ne.s32.totalorder %s17_s13, %s207_s14  ;;  %p213_p2 = scmp.lt.s32.totalorder %s207_s14, %s207_s14 }
   0x7   :  { %p214_p3 = por %p213_p2, %p212_p1 }
   0x9   :  { %p215_p4 = pnand %p214_p3, %p208_p0 }
   0xb   :  { %218 = shalt.err (!%p215_p4)
}
   0xc   :  { %s266_s15 = smov 64   ;;  %s267_s16 = smov 4  }
   0xd   :  { %22 = dma.hbm_to_vmem [thread:$0]  %s317_s0, 128, %s17_s13, [#allocation4], %s266_s15, %s266_s15, %s267_s16  }
   0xe   :  { %s268_s19 = smov [#allocation6]  }
   0xf   :  { %s28_s20 = sshll.u32 %s268_s19, 4  ;;  %s29_s20 = int_to_ptr.vmem [resolvable:$true] %s28_s20 }
  0x10   :  { %s227_s21 = scalar_lea.vmem %s29_s20, 256  ;;  %p232_p6 = scmp.lt.s32.totalorder %s29_s20, %s29_s20 }
  0x11   :  { %p228_p5 = scmp.ne.s32.totalorder %s29_s20, %s227_s21  ;;  %p233_p7 = scmp.lt.s32.totalorder %s227_s21, %s227_s21 }
  0x13   :  { %p234_p8 = por %p233_p7, %p232_p6 }
  0x15   :  { %p235_p9 = pnand %p234_p8, %p228_p5 }
  0x17   :  { %238 = shalt.err (!%p235_p9)
}
  0x18   :  { %34 = dma.hbm_to_vmem [thread:$0]  %s318_s1, 256, %s29_s20, [#allocation7], %s266_s15, %s266_s15, %s267_s16  }
  0x19   :  { %259 = dma.done.wait [#allocation4], 128  }
  0x1a   :  { %260 = vsyncadd [#allocation4], 4294967168 }
  0x1b   :  { %261 = dma.done.wait [#allocation7], 256  }
  0x1c   :  { %262 = vsyncadd [#allocation7], 4294967040  ;;  %vm48_vm0 = vcmask 523264   ;;  %v269_v0 = vmov 0.0   ;;  %vm270_vm1 = vmmov 0   ;;  %v196_v1 = vld [vmem:[#allocation6 + $0x8] sm:$0xff]  }
  0x1d   :  { %49 = vst.msk [vmem:[#allocation2] sm:$0xff] %vm48_vm0, %v269_v0  ;;  %50 = vst.msk [vmem:[#allocation2 + $0x8] sm:$0xff] %vm48_vm0, %v269_v0  ;;  %181 = vmatprep.subr.bf16.mxu0 %v269_v0  ;;  %185 = vmatprep.mubr.msk.bf16.mxu0 %vm270_vm1, %v269_v0  ;;  %v197_v2 = vld [vmem:[#allocation6] sm:$0xff]   ;;  %v198_v3 = vld [vmem:[#allocation3] sm:$0xff]   ;;  %vm76_vm2 = vcmask 261120   ;;  %vm148_vm3 = vcmask 519168  }
  0x1e   :  { %182 = vmatpush3.bf16.msra.mxu0 %v196_v1  ;;  %v173_v12 = vld [vmem:[%s319_s2] ss:$0 sm:$0xff]  ;;  %s271_s24 = smov [#allocation8]  }
  0x1f   :  { %183 = vmatprep.subr.bf16.mxu0 %v269_v0  ;;  %s156_s25 = sshll.u32 %s271_s24, 4  ;;  %s157_s25 = int_to_ptr.vmem [resolvable:$true] %s156_s25 }
  0x20   :  { %s239_s26 = scalar_lea.vmem %s157_s25, 128  ;;  %p244_p11 = scmp.lt.s32.totalorder %s157_s25, %s157_s25 }
  0x21   :  { %p240_p10 = scmp.ne.s32.totalorder %s157_s25, %s239_s26  ;;  %p245_p12 = scmp.lt.s32.totalorder %s239_s26, %s239_s26 }
  0x22   :  { %184 = vmatpush3.bf16.msra.mxu0 %v197_v2 }
  0x23   :  { %p246_p13 = por %p245_p12, %p244_p11 }
  0x24   :  { %v51_v4 = vld [vmem:[#allocation2] sm:$0xff]  ;;  %v52_v8 = vld [vmem:[#allocation2 + $0x8] sm:$0xff] }
  0x25   :  { %186 = vmatmul.mubr.msk.bf16.vlgmr.msra.gmra.mxu0 %vm76_vm2, %v198_v3  ;;  %p247_p0 = pnand %p246_p13, %p240_p10 }
  0xe5   :  { %v114_v5 = vpop.f32.mrf.mxu0 }
  0xe6   :  { %v121_v6 = vadd.f32 %v114_v5, %v51_v4 }
  0xe7   :  { %v187_v7 = vpop.f32.mrf.mxu0 }
  0xe8   :  { %124 = vst.msk [vmem:[#allocation2] sm:$0xff] %vm48_vm0, %v121_v6 }
  0xe9   :  { %v117_v9 = vpop.f32.mrf.mxu0 }
  0xea   :  { %v122_v10 = vadd.f32 %v117_v9, %v52_v8 }
  0xeb   :  { %v188_v11 = vpop.f32.mrf.mxu0 }
  0xec   :  { %125 = vst.msk [vmem:[#allocation2 + $0x8] sm:$0xff] %vm48_vm0, %v122_v10 }
  0xef   :  { %v129_v13 = vld [vmem:[#allocation2] sm:$0xff] }
  0xf0   :  { %v138_v14 = vadd.f32 %v173_v12, %v129_v13 }
  0xf2   :  { %v176_v15 = vpack.c.bf16 %v138_v14, %v138_v14 }
  0xf3   :  { %v130_v16 = vld [vmem:[#allocation2 + $0x8] sm:$0xff] }
  0xf4   :  { %v139_v17 = vadd.f32 %v173_v12, %v130_v16  ;;  %149 = vst.msk [vmem:[#allocation8] sm:$0xf] %vm148_vm3, %v176_v15 }
  0xf6   :  { %v177_v18 = vpack.c.bf16 %v139_v17, %v139_v17 }
  0xf8   :  { %150 = vst.msk [vmem:[#allocation8 + $0x4] sm:$0xf] %vm148_vm3, %v177_v18 }
  0xf9   :  { %250 = shalt.err (!%p247_p0)
}
  0xfa   :  { %162 = dma.vmem_to_hbm [thread:$0]  %s157_s25, 128, %s320_s3, [#allocation5], %s266_s15, %s266_s15, %s267_s16  }
  0xfb   :  { %263 = dma.done.wait [#allocation5], 128  }
  0xfc   :  { %264 = vsyncadd [#allocation5], 4294967168 }
  0xfd   :  { %166 = vsyncpa [#allocation4], 1 }
  0xfe   :  { %167 = vsyncpa [#allocation7], 1 }
  0xff   :  { %168 = vsyncpa [#allocation5], 1 }

</bundles_post_ra>
